<compile_context>
chip_gen: v7x
topology: tpu7x:2x2x1
jax: 0.10.0
libtpu: 0.0.40
codegen_flags: <defaults>
</compile_context>

<pallas_src>
import functools
from typing import NamedTuple, Optional, Tuple

import jax
import jax.numpy as jnp
from jax.experimental import pallas as pl
from jax.experimental.pallas import tpu as pltpu


def _round_up(x, m):
    return ((x + m - 1) // m) * m


# ---------------------------------------------------------------------------
# Layer 0: streaming tiled linear (+ fused bias / LeakyReLU epilogue)
# ---------------------------------------------------------------------------
def _layer0_kernel(x_ref, w_ref, b_ref, o_ref, acc_ref, *, negative_slope):
    # x_ref: (tm, tk)  w_ref: (tk, tn)  b_ref: (1, tn)  o_ref: (tm, tn)
    # acc_ref: (tm, tn) f32 scratch, persistent across the K grid axis.
    k = pl.program_id(2)

    @pl.when(k == 0)
    def _():
        acc_ref[...] = jnp.zeros_like(acc_ref)

    # In-kernel cast of the activation tile to the (pre-cast) weight dtype:
    # free VPU op hidden under the MXU, avoids a wrapper-side astype pass
    # over x (which would be an extra un-hidden HBM round trip).
    x = x_ref[...].astype(w_ref.dtype)
    acc_ref[...] += jnp.dot(x, w_ref[...], preferred_element_type=jnp.float32)

    @pl.when(k == pl.num_programs(2) - 1)
    def _():
        y = acc_ref[...] + b_ref[...].astype(jnp.float32)
        if negative_slope is not None:  # fused LeakyReLU epilogue (f32, VPU)
            y = jnp.where(y >= 0.0, y, jnp.float32(negative_slope) * y)
        o_ref[...] = y.astype(o_ref.dtype)


def layer0_linear_act(x_p, w_p, b_p, *, tm, tn, tk, negative_slope,
                      out_dtype, weight_buffers=2):
    """y = act(x_p @ w_p + b_p), all operands already padded to the tile grid."""
    Mp, Kp = x_p.shape
    Kw, Np = w_p.shape
    assert Kp == Kw, (Kp, Kw)
    assert b_p.shape == (1, Np), b_p.shape
    assert Mp % tm == 0 and Np % tn == 0 and Kp % tk == 0, (Mp, Np, Kp, tm, tn, tk)

    grid = (Mp // tm, Np // tn, Kp // tk)

    # Optional deeper pipelining of the weight stream (sweep in production if
    # the profile still shows exposed DMA at k-step boundaries, esp. on v7x).
    w_spec_kwargs = {}
    if weight_buffers is not None and weight_buffers > 2:
        w_spec_kwargs["pipeline_mode"] = pl.Buffered(weight_buffers)

    kernel = functools.partial(_layer0_kernel, negative_slope=negative_slope)

    return pl.pallas_call(
        kernel,
        out_shape=jax.ShapeDtypeStruct((Mp, Np), out_dtype),
        grid_spec=pltpu.PrefetchScalarGridSpec(
            num_scalar_prefetch=0,
            grid=grid,
            in_specs=[
                pl.BlockSpec((tm, tk), lambda i, j, k: (i, k)),                 # x
                pl.BlockSpec((tk, tn), lambda i, j, k: (k, j), **w_spec_kwargs),  # W0
                pl.BlockSpec((1, tn), lambda i, j, k: (0, j)),                  # b0
            ],
            out_specs=pl.BlockSpec((tm, tn), lambda i, j, k: (i, j)),
            scratch_shapes=[pltpu.VMEM((tm, tn), jnp.float32)],
        ),
        compiler_params=pltpu.CompilerParams(
            dimension_semantics=("parallel", "parallel", "arbitrary"),
            # v5e scoped default is only 16 MiB; 48 MiB fits under v7x's
            # 64 MiB physical VMEM with headroom for the enlarged tiles.
            vmem_limit_bytes=48 * 1024 * 1024,
        ),
    )(x_p, w_p, b_p)


# ---------------------------------------------------------------------------
# Layers 1..last fused into a single kernel (weights resident in VMEM)
# ---------------------------------------------------------------------------
def _fused_tail_kernel(*refs, n_layers, negative_slopes):
    # refs = (h_ref, w1, b1, w2, b2, ..., wn, bn, o_ref)
    h_ref = refs[0]
    o_ref = refs[-1]
    wb = refs[1:-1]

    h = h_ref[...].astype(jnp.float32)
    for li in range(n_layers):
        w = wb[2 * li][...]
        b = wb[2 * li + 1][...]
        h = jnp.dot(h.astype(w.dtype), w, preferred_element_type=jnp.float32)
        h = h + b.astype(jnp.float32)
        slope = negative_slopes[li]
        if slope is not None:
            h = jnp.where(h >= 0.0, h, jnp.float32(slope) * h)
    o_ref[...] = h.astype(o_ref.dtype)


def fused_tail_mlp(h_p, tail_params_p, *, tm, negative_slopes, out_dtype):
    """Apply all small tail layers in one pallas_call; grid over batch tiles."""
    Mp, D0p = h_p.shape
    assert Mp % tm == 0, (Mp, tm)
    n_layers = len(tail_params_p)
    assert n_layers == len(negative_slopes)
    Dlast_p = tail_params_p[-1][0].shape[1]

    in_specs = [pl.BlockSpec((tm, D0p), lambda i: (i, 0))]
    flat_args = []
    for (w_p, b_p) in tail_params_p:
        Kp, Np = w_p.shape
        assert b_p.shape == (1, Np)
        # Full-array blocks: tiny weights stay resident in VMEM for all tiles.
        in_specs.append(pl.BlockSpec((Kp, Np), lambda i: (0, 0)))
        in_specs.append(pl.BlockSpec((1, Np), lambda i: (0, 0)))
        flat_args += [w_p, b_p]

    kernel = functools.partial(_fused_tail_kernel, n_layers=n_layers,
                               negative_slopes=tuple(negative_slopes))

    return pl.pallas_call(
        kernel,
        out_shape=jax.ShapeDtypeStruct((Mp, Dlast_p), out_dtype),
        grid_spec=pltpu.PrefetchScalarGridSpec(
            num_scalar_prefetch=0,
            grid=(Mp // tm,),
            in_specs=in_specs,
            out_specs=pl.BlockSpec((tm, Dlast_p), lambda i: (i, 0)),
        ),
        compiler_params=pltpu.CompilerParams(
            dimension_semantics=("parallel",),
            vmem_limit_bytes=48 * 1024 * 1024,
        ),
    )(h_p, *flat_args)


# ---------------------------------------------------------------------------
# Parameter preparation (done ONCE, outside the forward pass)
# ---------------------------------------------------------------------------
class EncoderParams(NamedTuple):
    w0_p: jax.Array                 # (Kp, N0p), compute dtype (streamed layer)
    b0_p: jax.Array                 # (1, N0p), f32
    tail: Tuple                     # ((w_p, b_p), ...) padded, compute dtype
    n_features: int
    out_features: int               # latent size
    tk0: int                        # reduction tile for layer 0 (divides Kp)
    compute_dtype: Optional[object]


def prepare_encoder_params(params, *, compute_dtype=None, tk0=None):
    """Pre-pad (and optionally pre-cast to bf16) the Encoder params once.

    params: list of (w_t, b) with w_t shaped (in_features, out_features),
    i.e. the transpose of torch nn.Linear.weight.  Doing the pad/cast here
    (instead of per forward call) removes ~2 full HBM round trips of W0 per
    forward; compute_dtype=jnp.bfloat16 additionally halves the in-kernel
    W0 stream (recommended in production; f32 accumulation is kept).
    """
    assert len(params) >= 1
    w_dtype = compute_dtype if compute_dtype is not None else params[0][0].dtype

    # Layer 0: big (n_features x hidden0) weight, streamed in (tk, tn) slabs.
    w0, b0 = params[0]
    K, N0 = w0.shape
    if tk0 is None:
        tk0 = 2048 if jnp.dtype(w_dtype).itemsize == 2 else 1024
    tk0 = min(tk0, _round_up(K, 128))
    Kp = _round_up(K, tk0)
    N0p = _round_up(N0, 128)
    w0_p = jnp.pad(w0, ((0, Kp - K), (0, N0p - N0))).astype(w_dtype)
    b0_p = jnp.pad(b0.reshape(1, N0), ((0, 0), (0, N0p - N0))).astype(jnp.float32)

    # Tail layers: tiny, fully resident in VMEM inside one fused kernel.
    tail = []
    for (w, b) in params[1:]:
        ki, no = w.shape
        kip, nop = _round_up(ki, 128), _round_up(no, 128)
        w_p = jnp.pad(w, ((0, kip - ki), (0, nop - no))).astype(w_dtype)
        b_p = jnp.pad(b.reshape(1, no), ((0, 0), (0, nop - no))).astype(jnp.float32)
        tail.append((w_p, b_p))

    out_features = params[-1][0].shape[1]
    return EncoderParams(w0_p=w0_p, b0_p=b0_p, tail=tuple(tail),
                         n_features=K, out_features=out_features,
                         tk0=tk0, compute_dtype=compute_dtype)


# ---------------------------------------------------------------------------
# Encoder forward
# ---------------------------------------------------------------------------
def encoder_forward(x, prep: EncoderParams, *, negative_slope=0.2,
                    tm0=None, tn0=None, tm_tail=None,
                    activations_dtype=jnp.float32, weight_buffers=2):
    """SAUCIE Encoder forward.  LeakyReLU(0.2) after every layer but the last."""
    M, K = x.shape
    assert K == prep.n_features, (K, prep.n_features)
    Kp, N0p = prep.w0_p.shape
    tk0 = prep.tk0

    itemsize = jnp.dtype(x.dtype).itemsize
    m_align = 16 if itemsize == 2 else 8

    # tm: cover the batch with as few tiles as possible (W0, the dominant HBM
    # stream, is re-read once per M tile).  Capped at 1024 so the enlarged
    # tiles still fit v7x's 64 MiB physical VMEM; raise on v5e/v6e if desired.
    if tm0 is None:
        tm0 = min(_round_up(M, m_align), 1024)
    Mp = _round_up(M, tm0)

    # tn: lane-dense output.  If the batch collapsed to a single M tile, split
    # the N axis in two so the v7x megacore gets a parallel axis that does not
    # duplicate the W0 stream.
    if tn0 is None:
        if Mp // tm0 == 1 and N0p > 128 and N0p % 256 == 0:
            tn0 = N0p // 2
        else:
            tn0 = min(512, N0p)
        while N0p % tn0 != 0:
            tn0 -= 128

    # Pad only the activations (weights were pre-padded once).
    if Mp == M and Kp == K:
        x_p = x
    else:
        x_p = jnp.pad(x, ((0, Mp - M), (0, Kp - K)))

    has_tail = len(prep.tail) > 0
    h_p = layer0_linear_act(
        x_p, prep.w0_p, prep.b0_p,
        tm=tm0, tn=tn0, tk=tk0,
        negative_slope=negative_slope if has_tail else None,
        out_dtype=activations_dtype,
        weight_buffers=weight_buffers,
    )

    if not has_tail:
        return h_p[:M, :prep.out_features]

    if tm_tail is None:
        tm_tail = tm0                      # divides Mp by construction
    slopes = [negative_slope] * (len(prep.tail) - 1) + [None]  # Identity head
    out_p = fused_tail_mlp(h_p, prep.tail, tm=tm_tail,
                           negative_slopes=slopes, out_dtype=jnp.float32)
    return out_p[:M, :prep.out_features]


# ---------------------------------------------------------------------------
# Test harness (toy shapes; tile defaults target production scRNA-seq shapes)
# ---------------------------------------------------------------------------
if __name__ == "__main__":
    batch = 8
    n_features = 32          # number of genes (tens of thousands in production)
    layers = [32, 16, 8]     # cfg['layers']
    latent_size = 4          # cfg['latent_size']
    negative_slope = 0.2

    key = jax.random.PRNGKey(0)
    dims = [n_features] + layers + [latent_size]
    keys = jax.random.split(key, 2 * (len(dims) - 1) + 1)

    x = jax.random.normal(keys[0], (batch, n_features), dtype=jnp.float32)

    # Deterministic params matching nn.Linear shapes; torch weight is
    # (out, in) — we store its transpose (in, out).
    params = []
    for li in range(len(dims) - 1):
        fan_in, fan_out = dims[li], dims[li + 1]
        kw, kb = keys[1 + 2 * li], keys[2 + 2 * li]
        bound = 1.0 / (fan_in ** 0.5)
        w_t = jax.random.uniform(kw, (fan_in, fan_out), jnp.float32, -bound, bound)
        b = jax.random.uniform(kb, (fan_out,), jnp.float32, -bound, bound)
        params.append((w_t, b))

    # Reference: plain JAX, same math as the torch Encoder (no batchnorm).
    h_ref = x
    for idx, (w_t, b) in enumerate(params):
        h_ref = h_ref @ w_t + b
        if idx < len(params) - 1:
            h_ref = jnp.where(h_ref >= 0, h_ref, negative_slope * h_ref)

    # f32 path (exact vs reference).
    prep_f32 = prepare_encoder_params(params)  # compute_dtype=None -> f32
    y_f32 = encoder_forward(x, prep_f32, negative_slope=negative_slope)
    jax.block_until_ready(y_f32)
    assert y_f32.shape == (batch, latent_size)
    assert jnp.allclose(y_f32, h_ref, atol=1e-5, rtol=1e-5)

    # bf16 production path: weights pre-cast/pre-padded once, x cast in-kernel,
    # f32 accumulation.  Looser tolerance (bf16 mantissa).
    prep_bf16 = prepare_encoder_params(params, compute_dtype=jnp.bfloat16)
    y_bf16 = encoder_forward(x, prep_bf16, negative_slope=negative_slope)
    jax.block_until_ready(y_bf16)
    assert y_bf16.shape == (batch, latent_size)
    assert jnp.allclose(y_bf16, h_ref, atol=5e-2, rtol=5e-2)

    print("KERNEL_OK")
</pallas_src>

<mosaic_0001>
module attributes {stable_mosaic.version = 11 : i64} {
  func.func @_layer0_kernel(%arg0: i32, %arg1: i32, %arg2: i32, %arg3: memref<8x128xf32, #tpu.memory_space<vmem>>, %arg4: memref<128x128xf32, #tpu.memory_space<vmem>>, %arg5: memref<1x128xf32, #tpu.memory_space<vmem>>, %arg6: memref<8x128xf32, #tpu.memory_space<vmem>>, %arg7: memref<8x128xf32, #tpu.memory_space<vmem>>) attributes {dimension_semantics = [#tpu.dimension_semantics<parallel>, #tpu.dimension_semantics<parallel>, #tpu.dimension_semantics<arbitrary>], iteration_bounds = array<i64: 1, 1, 1>, scalar_prefetch = 0 : i64, scratch_operands = 1 : i64, tpu.core_type = #tpu.core_type<tc>, window_params = [{transform_indices = @transform_0, window_bounds = array<i64: 8, 128>}, {transform_indices = @transform_1, window_bounds = array<i64: 128, 128>}, {transform_indices = @transform_2, window_bounds = array<i64: 1, 128>}, {transform_indices = @transform_3, window_bounds = array<i64: 8, 128>}]} {
    %c0_i32 = arith.constant 0 : i32
    %0 = arith.cmpi eq, %arg2, %c0_i32 : i32
    %1 = arith.extui %0 : i1 to i32
    %c0_i32_0 = arith.constant 0 : i32
    %2 = arith.cmpi ne, %1, %c0_i32_0 : i32
    scf.if %2 {
      %cst_10 = arith.constant 0.000000e+00 : f32
      %12 = vector.broadcast %cst_10 : f32 to vector<8x128xf32>
      %c0_11 = arith.constant 0 : index
      %c0_12 = arith.constant 0 : index
      %13 = vector.load %arg7[%c0_11, %c0_12] : memref<8x128xf32, #tpu.memory_space<vmem>>, vector<8x128xf32>
      tpu.vector_store %arg7[%c0_11, %c0_12], %12 {strides = array<i32>} : memref<8x128xf32, #tpu.memory_space<vmem>>, vector<8x128xf32>,
    } else {
    }
    %c0 = arith.constant 0 : index
    %c0_1 = arith.constant 0 : index
    %3 = vector.load %arg3[%c0, %c0_1] : memref<8x128xf32, #tpu.memory_space<vmem>>, vector<8x128xf32>
    %c0_2 = arith.constant 0 : index
    %c0_3 = arith.constant 0 : index
    %4 = vector.load %arg7[%c0_2, %c0_3] : memref<8x128xf32, #tpu.memory_space<vmem>>, vector<8x128xf32>
    %c0_4 = arith.constant 0 : index
    %c0_5 = arith.constant 0 : index
    %5 = vector.load %arg4[%c0_4, %c0_5] : memref<128x128xf32, #tpu.memory_space<vmem>>, vector<128x128xf32>
    %cst = arith.constant dense<0.000000e+00> : vector<8x128xf32>
    %6 = tpu.matmul %3, %5, %cst {dimension_numbers = #tpu.dot_dimension_numbers<[1], [0], [0], [1], [0, 0, 1, 1], [], []>} : vector<8x128xf32>, vector<128x128xf32>, vector<8x128xf32> -> vector<8x128xf32>
    %7 = arith.addf %4, %6 : vector<8x128xf32>
    %c0_6 = arith.constant 0 : index
    %c0_7 = arith.constant 0 : index
    %8 = vector.load %arg7[%c0_6, %c0_7] : memref<8x128xf32, #tpu.memory_space<vmem>>, vector<8x128xf32>
    tpu.vector_store %arg7[%c0_6, %c0_7], %7 {strides = array<i32>} : memref<8x128xf32, #tpu.memory_space<vmem>>, vector<8x128xf32>,
    %c0_i32_8 = arith.constant 0 : i32
    %9 = arith.cmpi eq, %arg2, %c0_i32_8 : i32
    %10 = arith.extui %9 : i1 to i32
    %c0_i32_9 = arith.constant 0 : i32
    %11 = arith.cmpi ne, %10, %c0_i32_9 : i32
    scf.if %11 {
      %c0_10 = arith.constant 0 : index
      %c0_11 = arith.constant 0 : index
      %12 = vector.load %arg7[%c0_10, %c0_11] : memref<8x128xf32, #tpu.memory_space<vmem>>, vector<8x128xf32>
      %c0_12 = arith.constant 0 : index
      %c0_13 = arith.constant 0 : index
      %13 = vector.load %arg5[%c0_12, %c0_13] : memref<1x128xf32, #tpu.memory_space<vmem>>, vector<1x128xf32>
      %14 = vector.broadcast %13 : vector<1x128xf32> to vector<8x128xf32>
      %15 = arith.addf %12, %14 : vector<8x128xf32>
      %cst_14 = arith.constant 0.000000e+00 : f32
      %16 = vector.broadcast %cst_14 : f32 to vector<8x128xf32>
      %17 = arith.cmpf oge, %15, %16 : vector<8x128xf32>
      %cst_15 = arith.constant 2.000000e-01 : f32
      %18 = vector.broadcast %cst_15 : f32 to vector<8x128xf32>
      %19 = arith.mulf %18, %15 : vector<8x128xf32>
      %20 = arith.select %17, %15, %19 : vector<8x128xi1>, vector<8x128xf32>
      %c0_16 = arith.constant 0 : index
      %c0_17 = arith.constant 0 : index
      %21 = vector.load %arg6[%c0_16, %c0_17] : memref<8x128xf32, #tpu.memory_space<vmem>>, vector<8x128xf32>
      tpu.vector_store %arg6[%c0_16, %c0_17], %20 {strides = array<i32>} : memref<8x128xf32, #tpu.memory_space<vmem>>, vector<8x128xf32>,
    } else {
    }
    return
  }
  func.func @transform_0(%arg0: i32, %arg1: i32, %arg2: i32) -> (i32, i32) {
    %c0_i32 = arith.constant 0 : i32
    return %arg0, %arg2 : i32, i32
  }
  func.func @transform_1(%arg0: i32, %arg1: i32, %arg2: i32) -> (i32, i32) {
    %c0_i32 = arith.constant 0 : i32
    return %arg2, %arg1 : i32, i32
  }
  func.func @transform_2(%arg0: i32, %arg1: i32, %arg2: i32) -> (i32, i32) {
    %c0_i32 = arith.constant 0 : i32
    %c0_i32_0 = arith.constant 0 : i32
    return %c0_i32, %arg1 : i32, i32
  }
  func.func @transform_3(%arg0: i32, %arg1: i32, %arg2: i32) -> (i32, i32) {
    %c0_i32 = arith.constant 0 : i32
    return %arg0, %arg1 : i32, i32
  }
}

</mosaic_0001>

<bundles_post_ra>
// kernel: tpu_custom_call.1
= control target key start
LH: loop header
LB: loop body
LE: loop exit
PB: predicated region body
PF: predicated region fallthrough
CT: control target
= control target key end

     0   :  { %8 = vsyncpa [#allocation4], 0  ;;  %s399_s0 = inlined_call_operand.hbm [shape: f32[8,128], index: 0, kind: input, shape index: {}]   ;;  %s400_s1 = inlined_call_operand.hbm [shape: f32[128,128], index: 1, kind: input, shape index: {}]   ;;  %s401_s2 = inlined_call_operand.vmem [shape: f32[1,128], index: 2, kind: input, shape index: {}]   ;;  %s402_s3 = inlined_call_operand.hbm [shape: f32[8,128], index: 3, kind: output, shape index: {}]  }
   0x1   :  { %9 = vsyncpa [#allocation7], 0 }
   0x2   :  { %10 = vsyncpa [#allocation5], 0  ;;  %s325_s12 = smov [#allocation3]   ;;  %s326_s14 = smov [#allocation6]  }
   0x3   :  { %s17_s13 = sshll.u32 %s325_s12, 4  ;;  %s26_s15 = sshll.u32 %s326_s14, 4  ;;  %s18_s13 = int_to_ptr.vmem [resolvable:$true] %s17_s13  ;;  %s353_s15 = int_to_ptr.vmem [resolvable:$true] %s26_s15 }
   0x4   :  { %s253_s18 = scalar_lea.hbm %s399_s0, 128 }
   0x5   :  { %p254_p0 = scmp.ne.s32.totalorder %s399_s0, %s253_s18  ;;  %p257_p1 = scmp.lt.u32.totalorder %s253_s18, %s399_s0 }
   0x7   :  { %p259_p2 = pnand %p257_p1, %p254_p0 }
   0x9   :  { %262 = shalt.err (!%p259_p2)
}
   0xa   :  { %s263_s23 = scalar_lea.vmem %s18_s13, 128  ;;  %p268_p4 = scmp.lt.s32.totalorder %s18_s13, %s18_s13 }
   0xb   :  { %p264_p3 = scmp.ne.s32.totalorder %s18_s13, %s263_s23  ;;  %p269_p5 = scmp.lt.s32.totalorder %s263_s23, %s263_s23 }
   0xd   :  { %p270_p6 = por %p269_p5, %p268_p4 }
   0xf   :  { %p271_p7 = pnand %p270_p6, %p264_p3 }
  0x11   :  { %274 = shalt.err (!%p271_p7)
}
  0x12   :  { %20 = dma.hbm_to_vmem [thread:$0]  %s399_s0, 128, %s18_s13, [#allocation4]  }
  0x13   :  { %s275_s28 = scalar_lea.hbm %s400_s1, 2048 }
  0x14   :  { %p276_p8 = scmp.ne.s32.totalorder %s400_s1, %s275_s28  ;;  %p279_p9 = scmp.lt.u32.totalorder %s275_s28, %s400_s1 }
  0x16   :  { %p281_p10 = pnand %p279_p9, %p276_p8 }
  0x18   :  { %284 = shalt.err (!%p281_p10)
}
  0x19   :  { %s285_s6 = scalar_lea.vmem %s353_s15, 2048  ;;  %p290_p12 = scmp.lt.s32.totalorder %s353_s15, %s353_s15 }
  0x1a   :  { %p286_p11 = scmp.ne.s32.totalorder %s353_s15, %s285_s6  ;;  %p291_p13 = scmp.lt.s32.totalorder %s285_s6, %s285_s6 }
  0x1c   :  { %p292_p0 = por %p291_p13, %p290_p12 }
  0x1e   :  { %p293_p1 = pnand %p292_p0, %p286_p11 }
  0x20   :  { %296 = shalt.err (!%p293_p1)
}
  0x21   :  { %s327_s0 = smov 128   ;;  %s328_s7 = smov 8  }
  0x22   :  { %32 = dma.hbm_to_vmem [thread:$0]  %s400_s1, 2048, %s353_s15, [#allocation7], %s327_s0, %s327_s0, %s328_s7  }
  0x23   :  { %319 = dma.done.wait [#allocation4], 128  }
  0x24   :  { %320 = vsyncadd [#allocation4], 4294967168 }
  0x25   :  { %321 = dma.done.wait [#allocation7], 2048  }
  0x26   :  { %322 = vsyncadd [#allocation7], 4294965248  ;;  %v329_v0 = vmov 0.0|0.0   ;;  %vm330_vm0 = vmmov 0   ;;  %v331_v1 = vmov 0.0   ;;  %v48_v2 = vld [vmem:[#allocation6] sm:$0xff] }
  0x27   :  { %221 = vmatprep.subr.bf16.mxu0 %v329_v0  ;;  %218 = vmatprep.mubr.msk.f32.mxu0 %vm330_vm0, %v331_v1  ;;  %v49_v3 = vld [vmem:[#allocation6 + $0x8] sm:$0xff]  ;;  %v50_v4 = vld [vmem:[#allocation6 + $0x10] sm:$0xff]  ;;  %v51_v6 = vld [vmem:[#allocation6 + $0x18] sm:$0xff]  ;;  %s332_s11 = smov [#allocation8]  }
  0x28   :  { %v222_v5 = vpack.c.bf16 %v49_v3, %v48_v2  ;;  %v225_v7 = vpack.c.bf16 %v51_v6, %v50_v4  ;;  %v52_v8 = vld [vmem:[#allocation6 + $0x20] sm:$0xff]  ;;  %v53_v9 = vld [vmem:[#allocation6 + $0x28] sm:$0xff]  ;;  %v54_v11 = vld [vmem:[#allocation6 + $0x30] sm:$0xff]  ;;  %s158_s12 = sshll.u32 %s332_s11, 4  ;;  %s159_s12 = int_to_ptr.vmem [resolvable:$true] %s158_s12 }
  0x29   :  { %v228_v10 = vpack.c.bf16 %v53_v9, %v52_v8  ;;  %v55_v12 = vld [vmem:[#allocation6 + $0x38] sm:$0xff]  ;;  %v56_v14 = vld [vmem:[#allocation6 + $0x40] sm:$0xff]  ;;  %v57_v15 = vld [vmem:[#allocation6 + $0x48] sm:$0xff]  ;;  %s297_s13 = scalar_lea.vmem %s159_s12, 128  ;;  %p302_p3 = scmp.lt.s32.totalorder %s159_s12, %s159_s12 }
  0x2a   :  { %223 = vmatpush3.bf16.msra.mxu0 %v222_v5  ;;  %v231_v13 = vpack.c.bf16 %v55_v12, %v54_v11  ;;  %v234_v16 = vpack.c.bf16 %v57_v15, %v56_v14  ;;  %v58_v17 = vld [vmem:[#allocation6 + $0x50] sm:$0xff]  ;;  %v59_v18 = vld [vmem:[#allocation6 + $0x58] sm:$0xff]  ;;  %v60_v20 = vld [vmem:[#allocation6 + $0x60] sm:$0xff]  ;;  %p298_p2 = scmp.ne.s32.totalorder %s159_s12, %s297_s13  ;;  %p303_p4 = scmp.lt.s32.totalorder %s297_s13, %s297_s13 }
  0x2b   :  { %224 = vmatprep.subr.bf16.mxu0 %v329_v0  ;;  %v237_v19 = vpack.c.bf16 %v59_v18, %v58_v17  ;;  %v61_v21 = vld [vmem:[#allocation6 + $0x68] sm:$0xff]  ;;  %v62_v23 = vld [vmem:[#allocation6 + $0x70] sm:$0xff]  ;;  %v63_v24 = vld [vmem:[#allocation6 + $0x78] sm:$0xff] }
  0x2c   :  { %v240_v22 = vpack.c.bf16 %v61_v21, %v60_v20  ;;  %v243_v25 = vpack.c.bf16 %v63_v24, %v62_v23  ;;  %v46_v26 = vld [vmem:[#allocation3] sm:$0xff]  ;;  %p304_p5 = por %p303_p4, %p302_p3 }
  0x2d   :  { %v168_v27 = vld [vmem:[%s401_s2] ss:$0 sm:$0xff] }
  0x2e   :  { %226 = vmatpush3.bf16.msra.mxu0 %v225_v7  ;;  %p305_p6 = pnand %p304_p5, %p298_p2 }
  0x2f   :  { %227 = vmatprep.subr.bf16.mxu0 %v329_v0 }
  0x32   :  { %229 = vmatpush3.bf16.msra.mxu0 %v228_v10 }
  0x33   :  { %230 = vmatprep.subr.bf16.mxu0 %v329_v0 }
  0x36   :  { %232 = vmatpush3.bf16.msra.mxu0 %v231_v13 }
  0x37   :  { %233 = vmatprep.subr.bf16.mxu0 %v329_v0 }
  0x3a   :  { %235 = vmatpush3.bf16.msra.mxu0 %v234_v16 }
  0x3b   :  { %236 = vmatprep.subr.bf16.mxu0 %v329_v0 }
  0x3e   :  { %238 = vmatpush3.bf16.msra.mxu0 %v237_v19 }
  0x3f   :  { %239 = vmatprep.subr.bf16.mxu0 %v329_v0 }
  0x42   :  { %241 = vmatpush3.bf16.msra.mxu0 %v240_v22 }
  0x43   :  { %242 = vmatprep.subr.bf16.mxu0 %v329_v0 }
  0x46   :  { %244 = vmatpush3.bf16.msra.mxu0 %v243_v25 }
  0x49   :  { %219 = vmatmul.mubr.f32.vlgmr.msra.gmra.mrb[0].mxu0 %v46_v26 }
 0x11c   :  { %v130_v28 = vpop.f32.mrb[0].mxu0 }
 0x11d   :  { %v147_v29 = vadd.f32 %v168_v27, %v130_v28  ;;  %v220_v30 = vpop.f32.mrb[1].mxu0 }
 0x11f   :  { %v149_v31 = vmul.f32 0.2, %v147_v29  ;;  %vm148_vm1 = vcmp.ge.f32.partialorder %v147_v29, 0.0 }
 0x121   :  { %v150_v32 = vsel %vm148_vm1, %v147_v29, %v149_v31 }
 0x122   :  { %151 = vst [vmem:[#allocation8] sm:$0xff] %v150_v32 }
 0x123   :  { %308 = shalt.err (!%p305_p6)
}
 0x124   :  { %s309_s2 = scalar_lea.hbm %s402_s3, 128 }
 0x125   :  { %p310_p7 = scmp.ne.s32.totalorder %s402_s3, %s309_s2  ;;  %p313_p8 = scmp.lt.u32.totalorder %s309_s2, %s402_s3 }
 0x127   :  { %p315_p9 = pnand %p313_p8, %p310_p7 }
 0x129   :  { %318 = shalt.err (!%p315_p9)
}
 0x12a   :  { %161 = dma.vmem_to_hbm [thread:$0]  %s159_s12, 128, %s402_s3, [#allocation5]  }
 0x12b   :  { %323 = dma.done.wait [#allocation5], 128  }
 0x12c   :  { %324 = vsyncadd [#allocation5], 4294967168 }
 0x12d   :  { %165 = vsyncpa [#allocation4], 1 }
 0x12e   :  { %166 = vsyncpa [#allocation7], 1 }
 0x12f   :  { %167 = vsyncpa [#allocation5], 1 }

</bundles_post_ra>
